<compile_context>
chip_gen: v5e
topology: v5e:2x2
jax: 0.10.0
libtpu: 0.0.40
codegen_flags: <defaults>
</compile_context>

<pallas_src>
import functools

import jax
import jax.numpy as jnp
from jax.experimental import pallas as pl
from jax.experimental.pallas import tpu as pltpu

_LANE = 128     # vreg lane width
_SUBLANE = 8    # f32 sublane width


def _round_up(n, m):
    return ((n + m - 1) // m) * m


def block_kernel(x_ref, w1_ref, b1_ref, w2_ref, b2_ref, o_ref):
    # One (TM, Np) batch tile; weights/biases are whole, VMEM-resident blocks.
    x = x_ref[...]
    # L1: x @ W1 + b1 -> tanh   (MXU matmul, f32 accumulation; tanh on EUP)
    h = jnp.dot(x, w1_ref[...], preferred_element_type=jnp.float32) + b1_ref[...]
    h = jnp.tanh(h)
    # L2: h @ W2 + b2 -> tanh
    y = jnp.dot(h, w2_ref[...], preferred_element_type=jnp.float32) + b2_ref[...]
    y = jnp.tanh(y)
    # residual
    o_ref[...] = (y + x).astype(o_ref.dtype)


@functools.partial(jax.jit, static_argnames=("block_b",))
def block_forward(x, w1, b1, w2, b2, *, block_b=256):
    """Block forward.

    x : (B, in_N)
    w1: (in_N, width)   b1: (width,) or (1, width)
    w2: (width, out_N)  b2: (out_N,) or (1, out_N)
    Residual add requires out_N == in_N (as used in DRM: Block(m, m, m)).
    """
    B, in_N = x.shape
    width = w1.shape[1]
    out_N = w2.shape[1]
    assert out_N == in_N, "residual add requires out_N == in_N"

    # Lane-dense padded feature sizes (multiples of 128).
    Np = _round_up(in_N, _LANE)
    Wp = _round_up(width, _LANE)

    # Batch tiling: pick the number of tiles first, then the smallest
    # sublane-aligned TM that covers B -> minimal padded rows.
    n_tiles = max(1, -(-B // block_b))          # cdiv(B, block_b)
    TM = _round_up(-(-B // n_tiles), _SUBLANE)  # round_up(cdiv(B, n_tiles), 8)
    Bp = TM * n_tiles

    # Zero padding is exact for this op: padded x cols / W rows contribute 0,
    # padded hidden cols are tanh(0)=0, padded output cols are tanh(0)+0=0,
    # and padded batch rows / feature cols are sliced away at the end.
    xp = jnp.zeros((Bp, Np), x.dtype).at[:B, :in_N].set(x)
    w1p = jnp.zeros((Np, Wp), w1.dtype).at[:in_N, :width].set(w1)
    b1p = jnp.zeros((1, Wp), b1.dtype).at[:, :width].set(b1.reshape(1, width))
    w2p = jnp.zeros((Wp, Np), w2.dtype).at[:width, :out_N].set(w2)
    b2p = jnp.zeros((1, Np), b2.dtype).at[:, :out_N].set(b2.reshape(1, out_N))

    out_p = pl.pallas_call(
        block_kernel,
        out_shape=jax.ShapeDtypeStruct((Bp, Np), x.dtype),
        grid_spec=pltpu.PrefetchScalarGridSpec(
            num_scalar_prefetch=0,
            grid=(Bp // TM,),
            in_specs=[
                # batch-tiled activations (double-buffered by the pipeline)
                pl.BlockSpec((TM, Np), lambda i: (i, 0)),
                # weights / biases: same block every step -> VMEM-resident
                pl.BlockSpec((Np, Wp), lambda i: (0, 0)),
                pl.BlockSpec((1, Wp), lambda i: (0, 0)),
                pl.BlockSpec((Wp, Np), lambda i: (0, 0)),
                pl.BlockSpec((1, Np), lambda i: (0, 0)),
            ],
            out_specs=pl.BlockSpec((TM, Np), lambda i: (i, 0)),
        ),
        compiler_params=pltpu.CompilerParams(
            # Batch tiles are independent -> shard across TCs (v7x megacore).
            dimension_semantics=("parallel",),
        ),
    )(xp, w1p, b1p, w2p, b2p)

    # TODO(synk): when this Block is stacked into the full DRM model, fuse all
    # layers into one kernel with a VMEM-resident residual stream instead of
    # one pallas_call per Block.
    return out_p[:B, :out_N]


def block_forward_ref(x, w1, b1, w2, b2):
    h = jnp.tanh(x @ w1 + b1.reshape(1, -1))
    y = jnp.tanh(h @ w2 + b2.reshape(1, -1))
    return y + x


def _make_params(key, in_N, width, out_N):
    k1, kb1, k2, kb2 = jax.random.split(key, 4)
    bound1 = 1.0 / (in_N ** 0.5)
    w1 = jax.random.uniform(k1, (in_N, width), jnp.float32, -bound1, bound1)
    b1 = jax.random.uniform(kb1, (1, width), jnp.float32, -bound1, bound1)
    bound2 = 1.0 / (width ** 0.5)
    w2 = jax.random.uniform(k2, (width, out_N), jnp.float32, -bound2, bound2)
    b2 = jax.random.uniform(kb2, (1, out_N), jnp.float32, -bound2, bound2)
    return w1, b1, w2, b2


if __name__ == "__main__":
    key = jax.random.PRNGKey(0)

    # Case 1: small shapes matching DRM usage Block(m, m, m) with m=32.
    kx1, kp1, kx2, kp2 = jax.random.split(key, 4)
    B1, N1, W1 = 8, 32, 32
    x1 = jax.random.normal(kx1, (B1, N1), dtype=jnp.float32)
    p1 = _make_params(kp1, N1, W1, N1)
    out1 = jax.block_until_ready(block_forward(x1, *p1))
    ref1 = block_forward_ref(x1, *p1)
    assert out1.shape == (B1, N1)
    assert jnp.allclose(out1, ref1, atol=1e-5, rtol=1e-5), "case1 mismatch"

    # Case 2: larger batch / lane-dense features -> multi-step parallel grid.
    B2, N2, W2 = 400, 128, 256
    x2 = jax.random.normal(kx2, (B2, N2), dtype=jnp.float32)
    p2 = _make_params(kp2, N2, W2, N2)
    out2 = jax.block_until_ready(block_forward(x2, *p2))
    ref2 = block_forward_ref(x2, *p2)
    assert out2.shape == (B2, N2)
    assert jnp.allclose(out2, ref2, atol=1e-5, rtol=1e-5), "case2 mismatch"

    print("KERNEL_OK")
</pallas_src>

<mosaic_0001>
module attributes {stable_mosaic.version = 11 : i64} {
  func.func @block_kernel(%arg0: i32, %arg1: memref<8x128xf32, #tpu.memory_space<vmem>>, %arg2: memref<128x128xf32, #tpu.memory_space<vmem>>, %arg3: memref<1x128xf32, #tpu.memory_space<vmem>>, %arg4: memref<128x128xf32, #tpu.memory_space<vmem>>, %arg5: memref<1x128xf32, #tpu.memory_space<vmem>>, %arg6: memref<8x128xf32, #tpu.memory_space<vmem>>) attributes {dimension_semantics = [#tpu.dimension_semantics<parallel>], iteration_bounds = array<i64: 1>, scalar_prefetch = 0 : i64, scratch_operands = 0 : i64, tpu.core_type = #tpu.core_type<tc>, window_params = [{transform_indices = @transform_0, window_bounds = array<i64: 8, 128>}, {pipeline_mode = #tpu.pipeline_mode<synchronous>, transform_indices = @transform_1, window_bounds = array<i64: 128, 128>}, {pipeline_mode = #tpu.pipeline_mode<synchronous>, transform_indices = @transform_2, window_bounds = array<i64: 1, 128>}, {pipeline_mode = #tpu.pipeline_mode<synchronous>, transform_indices = @transform_3, window_bounds = array<i64: 128, 128>}, {pipeline_mode = #tpu.pipeline_mode<synchronous>, transform_indices = @transform_4, window_bounds = array<i64: 1, 128>}, {transform_indices = @transform_5, window_bounds = array<i64: 8, 128>}]} {
    %c0 = arith.constant 0 : index
    %c0_0 = arith.constant 0 : index
    %0 = vector.load %arg1[%c0, %c0_0] : memref<8x128xf32, #tpu.memory_space<vmem>>, vector<8x128xf32>
    %c0_1 = arith.constant 0 : index
    %c0_2 = arith.constant 0 : index
    %1 = vector.load %arg2[%c0_1, %c0_2] : memref<128x128xf32, #tpu.memory_space<vmem>>, vector<128x128xf32>
    %cst = arith.constant dense<0.000000e+00> : vector<8x128xf32>
    %2 = tpu.matmul %0, %1, %cst {dimension_numbers = #tpu.dot_dimension_numbers<[1], [0], [0], [1], [0, 0, 1, 1], [], []>} : vector<8x128xf32>, vector<128x128xf32>, vector<8x128xf32> -> vector<8x128xf32>
    %c0_3 = arith.constant 0 : index
    %c0_4 = arith.constant 0 : index
    %3 = vector.load %arg3[%c0_3, %c0_4] : memref<1x128xf32, #tpu.memory_space<vmem>>, vector<1x128xf32>
    %4 = vector.broadcast %3 : vector<1x128xf32> to vector<8x128xf32>
    %5 = arith.addf %2, %4 : vector<8x128xf32>
    %6 = math.tanh %5 : vector<8x128xf32>
    %c0_5 = arith.constant 0 : index
    %c0_6 = arith.constant 0 : index
    %7 = vector.load %arg4[%c0_5, %c0_6] : memref<128x128xf32, #tpu.memory_space<vmem>>, vector<128x128xf32>
    %cst_7 = arith.constant dense<0.000000e+00> : vector<8x128xf32>
    %8 = tpu.matmul %6, %7, %cst_7 {dimension_numbers = #tpu.dot_dimension_numbers<[1], [0], [0], [1], [0, 0, 1, 1], [], []>} : vector<8x128xf32>, vector<128x128xf32>, vector<8x128xf32> -> vector<8x128xf32>
    %c0_8 = arith.constant 0 : index
    %c0_9 = arith.constant 0 : index
    %9 = vector.load %arg5[%c0_8, %c0_9] : memref<1x128xf32, #tpu.memory_space<vmem>>, vector<1x128xf32>
    %10 = vector.broadcast %9 : vector<1x128xf32> to vector<8x128xf32>
    %11 = arith.addf %8, %10 : vector<8x128xf32>
    %12 = math.tanh %11 : vector<8x128xf32>
    %13 = arith.addf %12, %0 : vector<8x128xf32>
    %c0_10 = arith.constant 0 : index
    %c0_11 = arith.constant 0 : index
    %14 = vector.load %arg6[%c0_10, %c0_11] : memref<8x128xf32, #tpu.memory_space<vmem>>, vector<8x128xf32>
    tpu.vector_store %arg6[%c0_10, %c0_11], %13 {strides = array<i32>} : memref<8x128xf32, #tpu.memory_space<vmem>>, vector<8x128xf32>,
    return
  }
  func.func @transform_0(%arg0: i32) -> (i32, i32) {
    %c0_i32 = arith.constant 0 : i32
    %c0_i32_0 = arith.constant 0 : i32
    return %arg0, %c0_i32 : i32, i32
  }
  func.func @transform_1(%arg0: i32) -> (i32, i32) {
    %c0_i32 = arith.constant 0 : i32
    %c0_i32_0 = arith.constant 0 : i32
    %c0_i32_1 = arith.constant 0 : i32
    return %c0_i32, %c0_i32_0 : i32, i32
  }
  func.func @transform_2(%arg0: i32) -> (i32, i32) {
    %c0_i32 = arith.constant 0 : i32
    %c0_i32_0 = arith.constant 0 : i32
    %c0_i32_1 = arith.constant 0 : i32
    return %c0_i32, %c0_i32_0 : i32, i32
  }
  func.func @transform_3(%arg0: i32) -> (i32, i32) {
    %c0_i32 = arith.constant 0 : i32
    %c0_i32_0 = arith.constant 0 : i32
    %c0_i32_1 = arith.constant 0 : i32
    return %c0_i32, %c0_i32_0 : i32, i32
  }
  func.func @transform_4(%arg0: i32) -> (i32, i32) {
    %c0_i32 = arith.constant 0 : i32
    %c0_i32_0 = arith.constant 0 : i32
    %c0_i32_1 = arith.constant 0 : i32
    return %c0_i32, %c0_i32_0 : i32, i32
  }
  func.func @transform_5(%arg0: i32) -> (i32, i32) {
    %c0_i32 = arith.constant 0 : i32
    %c0_i32_0 = arith.constant 0 : i32
    return %arg0, %c0_i32 : i32, i32
  }
}

</mosaic_0001>

<bundles_post_ra>
// kernel: block_forward.1
= control target key start
LH: loop header
LB: loop body
LE: loop exit
PB: predicated region body
PF: predicated region fallthrough
CT: control target
= control target key end

     0   :  { %s294_s0 = inlined_call_operand.vmem [shape: f32[8,128], index: 0, kind: input, shape index: {}]   ;;  %s295_s1 = inlined_call_operand.vmem [shape: f32[128,128], index: 1, kind: input, shape index: {}]   ;;  %s296_s2 = inlined_call_operand.vmem [shape: f32[1,128], index: 2, kind: input, shape index: {}]   ;;  %s297_s3 = inlined_call_operand.vmem [shape: f32[128,128], index: 3, kind: input, shape index: {}]   ;;  %s298_s4 = inlined_call_operand.vmem [shape: f32[1,128], index: 4, kind: input, shape index: {}]   ;;  %s299_s5 = inlined_call_operand.hbm [shape: f32[8,128], index: 5, kind: output, shape index: {}]  }
   0x1   :  { %v37_v0 = vld [vmem:[%s295_s1 + $0x78] sm:$0xff]  ;;  %v36_v1 = vld [vmem:[%s295_s1 + $0x70] sm:$0xff]  ;;  %v35_v2 = vld [vmem:[%s295_s1 + $0x68] sm:$0xff] }
   0x2   :  { %42 = vmatpush.msra.mxu0 %v37_v0  ;;  %v34_v3 = vld [vmem:[%s295_s1 + $0x60] sm:$0xff]  ;;  %v78_v4 = vld [vmem:[%s297_s3 + $0x78] sm:$0xff]  ;;  %v77_v6 = vld [vmem:[%s297_s3 + $0x70] sm:$0xff] }
   0x3   :  { %v33_v5 = vld [vmem:[%s295_s1 + $0x58] sm:$0xff]  ;;  %83 = vmatpush.msra.mxu1 %v78_v4  ;;  %v76_v7 = vld [vmem:[%s297_s3 + $0x68] sm:$0xff]  ;;  %v32_v8 = vld [vmem:[%s295_s1 + $0x50] sm:$0xff] }
   0x4   :  { %43 = vmatpush.msra.mxu0 %v36_v1  ;;  %v75_v9 = vld [vmem:[%s297_s3 + $0x60] sm:$0xff]  ;;  %v31_v10 = vld [vmem:[%s295_s1 + $0x48] sm:$0xff] }
   0x5   :  { %84 = vmatpush.msra.mxu1 %v77_v6 }
   0x6   :  { %44 = vmatpush.msra.mxu0 %v35_v2 }
   0x7   :  { %85 = vmatpush.msra.mxu1 %v76_v7 }
   0x8   :  { %45 = vmatpush.msra.mxu0 %v34_v3 }
   0xa   :  { %46 = vmatpush.msra.mxu0 %v33_v5 }
   0xb   :  { %10 = vsyncpa [#allocation3], 0  ;;  %v74_v11 = vld [vmem:[%s297_s3 + $0x58] sm:$0xff]  ;;  %v30_v12 = vld [vmem:[%s295_s1 + $0x40] sm:$0xff]  ;;  %86 = vmatpush.msra.mxu1 %v75_v9  ;;  %s155_s11 = smov [#allocation2]   ;;  %s113_s14 = sshll.u32 %s299_s5, 4  ;;  %s114_s14 = int_to_ptr.hbm [resolvable:$true] %s113_s14 }
   0xc   :  { %47 = vmatpush.msra.mxu0 %v32_v8  ;;  %v73_v13 = vld [vmem:[%s297_s3 + $0x50] sm:$0xff]  ;;  %v29_v14 = vld [vmem:[%s295_s1 + $0x38] sm:$0xff]  ;;  %v72_v15 = vld [vmem:[%s297_s3 + $0x48] sm:$0xff] }
   0xd   :  { %87 = vmatpush.msra.mxu1 %v74_v11  ;;  %v28_v16 = vld [vmem:[%s295_s1 + $0x30] sm:$0xff]  ;;  %v71_v17 = vld [vmem:[%s297_s3 + $0x40] sm:$0xff]  ;;  %v27_v18 = vld [vmem:[%s295_s1 + $0x28] sm:$0xff] }
   0xe   :  { %48 = vmatpush.msra.mxu0 %v31_v10  ;;  %v70_v19 = vld [vmem:[%s297_s3 + $0x38] sm:$0xff]  ;;  %v26_v20 = vld [vmem:[%s295_s1 + $0x20] sm:$0xff]  ;;  %v69_v21 = vld [vmem:[%s297_s3 + $0x30] sm:$0xff] }
   0xf   :  { %88 = vmatpush.msra.mxu1 %v73_v13  ;;  %v25_v22 = vld [vmem:[%s295_s1 + $0x18] sm:$0xff]  ;;  %v68_v23 = vld [vmem:[%s297_s3 + $0x28] sm:$0xff]  ;;  %v24_v24 = vld [vmem:[%s295_s1 + $0x10] sm:$0xff] }
  0x10   :  { %49 = vmatpush.msra.mxu0 %v30_v12  ;;  %v23_v25 = vld [vmem:[%s295_s1 + $0x8] sm:$0xff]  ;;  %v22_v26 = vld [vmem:[%s295_s1] sm:$0xff]  ;;  %v66_v29 = vld [vmem:[%s297_s3 + $0x18] sm:$0xff] }
  0x11   :  { %89 = vmatpush.msra.mxu1 %v72_v15  ;;  %v21_v27 = vld [vmem:[%s294_s0] sm:$0xff]  ;;  %v65_v30 = vld [vmem:[%s297_s3 + $0x10] sm:$0xff]  ;;  %v64_v31 = vld [vmem:[%s297_s3 + $0x8] sm:$0xff] }
  0x12   :  { %50 = vmatpush.msra.mxu0 %v29_v14  ;;  %v67_v28 = vld [vmem:[%s297_s3 + $0x20] sm:$0xff] }
  0x13   :  { %90 = vmatpush.msra.mxu1 %v71_v17  ;;  %v63_v32 = vld [vmem:[%s297_s3] sm:$0xff]  ;;  %s111_s3 = sshll.u32 %s155_s11, 4  ;;  %s112_s3 = int_to_ptr.vmem [resolvable:$true] %s111_s3 }
  0x14   :  { %51 = vmatpush.msra.mxu0 %v28_v16  ;;  %v123_v33 = vld [vmem:[%s296_s2] ss:$0 sm:$0xff] }
  0x15   :  { %91 = vmatpush.msra.mxu1 %v70_v19  ;;  %v124_v37 = vld [vmem:[%s298_s4] ss:$0 sm:$0xff] }
  0x16   :  { %52 = vmatpush.msra.mxu0 %v27_v18 }
  0x17   :  { %92 = vmatpush.msra.mxu1 %v69_v21 }
  0x18   :  { %53 = vmatpush.msra.mxu0 %v26_v20 }
  0x19   :  { %93 = vmatpush.msra.mxu1 %v68_v23 }
  0x1a   :  { %54 = vmatpush.msra.mxu0 %v25_v22 }
  0x1b   :  { %94 = vmatpush.msra.mxu1 %v67_v28 }
  0x1c   :  { %55 = vmatpush.msra.mxu0 %v24_v24 }
  0x1d   :  { %95 = vmatpush.msra.mxu1 %v66_v29 }
  0x1e   :  { %56 = vmatpush.msra.mxu0 %v23_v25 }
  0x1f   :  { %96 = vmatpush.msra.mxu1 %v65_v30 }
  0x20   :  { %57 = vmatpush.msra.mxu0 %v22_v26 }
  0x21   :  { %58 = vmatmul.f32.vlgmr.msra.gmra.mxu0 %v21_v27  ;;  %97 = vmatpush.msra.mxu1 %v64_v31 }
  0x23   :  { %98 = vmatpush.msra.mxu1 %v63_v32 }
  0x9e   :  { %v59_v34 = vpop.f32.mrf.mxu0 }
  0x9f   :  { %v60_v35 = vadd.f32 %v123_v33, %v59_v34 }
  0xa1   :  { %125 = vtanh.f32 %v60_v35 }
  0xa7   :  { %v126_v36 = vpop.eup %125 }
  0xa8   :  { %99 = vmatmul.f32.vlgmr.msra.gmra.mxu1 %v126_v36 }
 0x125   :  { %v100_v38 = vpop.f32.mrf.mxu1 }
 0x126   :  { %v101_v39 = vadd.f32 %v124_v37, %v100_v38 }
 0x128   :  { %127 = vtanh.f32 %v101_v39 }
 0x12e   :  { %v128_v40 = vpop.eup %127 }
 0x12f   :  { %v104_v41 = vadd.f32 %v128_v40, %v21_v27 }
 0x131   :  { %105 = vst [vmem:[#allocation2] sm:$0xff] %v104_v41 }
 0x132   :  { %116 = dma.vmem_to_hbm [thread:$0]  %s112_s3, 128, %s114_s14, [#allocation3]  }
 0x133   :  { %153 = dma.done.wait [#allocation3], 128  }
 0x134   :  { %154 = vsyncadd [#allocation3], 4294967168 }
 0x135   :  { %121 = vsyncpa [#allocation3], 1 }

</bundles_post_ra>
